<compile_context>
chip_gen: v5e
topology: v5e:2x2
jax: 0.10.0
libtpu: 0.0.40
codegen_flags: <defaults>
</compile_context>

<pallas_src>
import functools

import jax
import jax.numpy as jnp
from jax.experimental import pallas as pl
from jax.experimental.pallas import tpu as pltpu

DROPOUT_P = 0.5

_VSPEC = lambda: pl.BlockSpec(memory_space=pltpu.MemorySpace.VMEM)
_SSPEC = lambda: pl.BlockSpec(memory_space=pltpu.MemorySpace.SMEM)


# ----------------------------------------------------------------------------
# Kernel 1: base GCN (clean + shuffled fused) + PReLU + PReLU + dropout
# ----------------------------------------------------------------------------
def base_gcn_kernel(x_ref, shuf_ref, w_ref, adj_ref, b_ref, mask_ref,
                    gcn_alpha_ref, act_alpha_ref, o_ref):
    xw = jnp.dot(x_ref[...], w_ref[...], preferred_element_type=jnp.float32)
    sw = jnp.dot(shuf_ref[...], w_ref[...], preferred_element_type=jnp.float32)
    cat = jnp.concatenate([xw, sw], axis=1)                  # (N, 2*n_h)
    h = jnp.dot(adj_ref[...], cat, preferred_element_type=jnp.float32)
    b2 = jnp.concatenate([b_ref[...], b_ref[...]], axis=1)   # (1, 2*n_h)
    h = h + b2
    ga = gcn_alpha_ref[0]
    h = jnp.where(h >= 0.0, h, ga * h)                       # GCN's PReLU
    aa = act_alpha_ref[0]
    h = jnp.where(h >= 0.0, h, aa * h)                       # outer self.act
    o_ref[...] = h * mask_ref[...]                           # dropout (pre-scaled mask)


def pallas_base_gcn(x, shuf, w, adj, b, mask, gcn_alpha, act_alpha):
    N = x.shape[0]
    n_h = w.shape[1]
    return pl.pallas_call(
        base_gcn_kernel,
        out_shape=jax.ShapeDtypeStruct((N, 2 * n_h), jnp.float32),
        in_specs=[_VSPEC(), _VSPEC(), _VSPEC(), _VSPEC(), _VSPEC(), _VSPEC(),
                  _SSPEC(), _SSPEC()],
        out_specs=_VSPEC(),
    )(x, shuf, w, adj, b, mask, gcn_alpha, act_alpha)


# ----------------------------------------------------------------------------
# Kernel 2: per-motif GCN (h1/h2 fused) + DGI discriminator, grid=(n_motif,)
# ----------------------------------------------------------------------------
def motif_stage_kernel(x1sf_ref, adj_ref, w_ref, b_ref, m_ref,
                       alpha_ref, bb_ref, x2_ref, logits_ref):
    i = pl.program_id(0)
    half = x1sf_ref.shape[1] // 2
    n_h2 = w_ref.shape[1]

    x1 = x1sf_ref[:, :half]
    sf = x1sf_ref[:, half:]
    x1w = jnp.dot(x1, w_ref[...], preferred_element_type=jnp.float32)
    sfw = jnp.dot(sf, w_ref[...], preferred_element_type=jnp.float32)
    cat = jnp.concatenate([x1w, sfw], axis=1)                # (N, 2*n_h2)
    h = jnp.dot(adj_ref[...], cat, preferred_element_type=jnp.float32)
    b2 = jnp.concatenate([b_ref[...], b_ref[...]], axis=1)
    h = h + b2
    a = alpha_ref[i]
    h = jnp.where(h >= 0.0, h, a * h)                        # motif GCN PReLU

    h1 = h[:, :n_h2]
    h2 = h[:, n_h2:]
    x2_ref[...] = h1

    # DGI readout + bilinear discriminator, rewritten as h @ (M @ c^T):
    c = jax.nn.sigmoid(jnp.mean(h1, axis=0, keepdims=True))  # (1, n_h2)
    mc_row = jax.lax.dot_general(c, m_ref[...], (((1,), (1,)), ((), ())),
                                 preferred_element_type=jnp.float32)  # (1, n_h2)
    bb = bb_ref[i]
    s1 = jnp.sum(h1 * mc_row, axis=1, keepdims=True) + bb    # (N, 1) pos
    s2 = jnp.sum(h2 * mc_row, axis=1, keepdims=True) + bb    # (N, 1) neg
    logits_ref[...] = jnp.concatenate([s1, s2], axis=1).T    # (2, N) lane-dense


def pallas_motif_stage(x1sf, motif_adj, motif_w, motif_b, disc_m,
                       motif_alpha, disc_b):
    n_motif, N, _ = motif_adj.shape
    n_h = motif_w.shape[1]
    n_h2 = motif_w.shape[2]
    two_h = x1sf.shape[1]
    return pl.pallas_call(
        motif_stage_kernel,
        grid=(n_motif,),
        out_shape=(jax.ShapeDtypeStruct((n_motif, N, n_h2), jnp.float32),
                   jax.ShapeDtypeStruct((n_motif, 2, N), jnp.float32)),
        in_specs=[
            pl.BlockSpec((N, two_h), lambda i: (0, 0)),           # x1|sf (shared)
            pl.BlockSpec((None, N, N), lambda i: (i, 0, 0)),      # motif adj_i
            pl.BlockSpec((None, n_h, n_h2), lambda i: (i, 0, 0)), # motif W_i
            pl.BlockSpec((None, 1, n_h2), lambda i: (i, 0, 0)),   # motif b_i
            pl.BlockSpec((None, n_h2, n_h2), lambda i: (i, 0, 0)),# disc M_i
            _SSPEC(),                                             # motif alphas
            _SSPEC(),                                             # disc biases
        ],
        out_specs=(
            pl.BlockSpec((None, N, n_h2), lambda i: (i, 0, 0)),
            pl.BlockSpec((None, 2, N), lambda i: (i, 0, 0)),
        ),
        compiler_params=pltpu.CompilerParams(
            dimension_semantics=("parallel",)),
    )(x1sf, motif_adj, motif_w, motif_b, disc_m, motif_alpha, disc_b)


# ----------------------------------------------------------------------------
# Kernel 3: attention over motifs + fused linear + softmax
# ----------------------------------------------------------------------------
def attn_head_kernel(x3_ref, w_ref, b_ref, u_ref, lw_ref, lb_ref,
                     pred_ref, beta_ref, *, n_motif):
    mn, d = x3_ref.shape
    n = mn // n_motif
    x3 = x3_ref[...]                                          # (n_motif*N, d)
    proj = jnp.tanh(jnp.dot(x3, w_ref[...],
                            preferred_element_type=jnp.float32) + b_ref[...])
    scores = jnp.sum(proj * u_ref[...], axis=1, keepdims=True)  # (n_motif*N, 1)

    s = [scores[m * n:(m + 1) * n, :] for m in range(n_motif)]
    smax = functools.reduce(jnp.maximum, s)
    exps = [jnp.exp(sm - smax) for sm in s]
    inv_denom = 1.0 / functools.reduce(jnp.add, exps)

    betas = []
    x4 = jnp.zeros((n, d), jnp.float32)
    for m in range(n_motif):
        bm = exps[m] * inv_denom                              # (N, 1)
        betas.append(bm)
        x4 = x4 + bm * x3[m * n:(m + 1) * n, :]
    beta_ref[...] = jnp.concatenate(betas, axis=1)            # (N, n_motif), one store

    # fused linear + softmax; x4 never leaves VMEM
    z = jnp.dot(x4, lw_ref[...], preferred_element_type=jnp.float32) + lb_ref[...]
    z = z - jnp.max(z, axis=1, keepdims=True)
    e = jnp.exp(z)
    pred_ref[...] = e / jnp.sum(e, axis=1, keepdims=True)


def pallas_attention_head(x3_2d, att_w, att_b, att_u_row, lin_w, lin_b, n_motif):
    mn, d = x3_2d.shape
    N = mn // n_motif
    n_class = lin_w.shape[1]
    return pl.pallas_call(
        functools.partial(attn_head_kernel, n_motif=n_motif),
        out_shape=(jax.ShapeDtypeStruct((N, n_class), jnp.float32),
                   jax.ShapeDtypeStruct((N, n_motif), jnp.float32)),
        in_specs=[_VSPEC()] * 6,
        out_specs=(_VSPEC(), _VSPEC()),
    )(x3_2d, att_w, att_b, att_u_row, lin_w, lin_b)


# ----------------------------------------------------------------------------
# Fallback kernel for n_motif == 1 (no attention): linear + softmax
# ----------------------------------------------------------------------------
def linear_softmax_kernel(x_ref, w_ref, b_ref, o_ref):
    z = jnp.dot(x_ref[...], w_ref[...], preferred_element_type=jnp.float32) + b_ref[...]
    z = z - jnp.max(z, axis=1, keepdims=True)
    e = jnp.exp(z)
    o_ref[...] = e / jnp.sum(e, axis=1, keepdims=True)


def pallas_linear_softmax(x, w, b):
    N, C = x.shape[0], w.shape[1]
    return pl.pallas_call(
        linear_softmax_kernel,
        out_shape=jax.ShapeDtypeStruct((N, C), jnp.float32),
        in_specs=[_VSPEC(), _VSPEC(), _VSPEC()],
        out_specs=_VSPEC(),
    )(x, w, b)


# ----------------------------------------------------------------------------
# motif_emb forward
# ----------------------------------------------------------------------------
def motif_emb_forward(params, x, adj, motif_batch, shuf_fts, dropout_key,
                      training=True):
    N = x.shape[0]
    n_h = params["gcn_w"].shape[1]
    n_motif = motif_batch.shape[0]

    # Dropout masks generated on host (pre-scaled), applied in the GCN epilogue.
    if training:
        keep = 1.0 - DROPOUT_P
        mask = (jax.random.bernoulli(dropout_key, keep, (N, 2 * n_h))
                .astype(jnp.float32) / keep)
    else:
        mask = jnp.ones((N, 2 * n_h), jnp.float32)

    # x1 = dropout(act(gcn(x, adj)));  sf = dropout(act(gcn(shuf_fts, adj)))
    # computed in one fused kernel: x1sf = [x1 | sf]  of shape (N, 2*n_h)
    x1sf = pallas_base_gcn(x, shuf_fts, params["gcn_w"], adj, params["gcn_b"],
                           mask, params["gcn_alpha"], params["act_alpha"])

    # combinedDGI over all motifs in a single gridded kernel.
    x2, logits_mn = pallas_motif_stage(
        x1sf, motif_batch, params["motif_w"], params["motif_b"],
        params["disc_m"], params["motif_alpha"], params["disc_b"])
    # torch: cat over motifs of [pos scores (N), neg scores (N)] along dim 1
    logits = logits_mn.reshape(1, -1)                         # (1, 2*N*n_motif)

    if n_motif > 1:
        n_h2 = params["motif_w"].shape[2]
        x3_2d = x2.reshape(n_motif * N, n_h2)                 # collapse leading dims
        predicts, weights = pallas_attention_head(
            x3_2d, params["att_w"], params["att_b"], params["att_u"].T,
            params["lin_w"], params["lin_b"], n_motif)
    else:
        predicts = pallas_linear_softmax(x2[0], params["lin_w"], params["lin_b"])
        weights = jnp.ones((N, 1), jnp.float32)  # TODO(synk): `.cuda()` placement ignored

    # torch: torch.cat(2 * [weights]).permute(1, 0)
    weights = jnp.concatenate([weights, weights], axis=0).T   # (n_motif, 2*N)
    return logits, predicts, weights


# ----------------------------------------------------------------------------
# main
# ----------------------------------------------------------------------------
if __name__ == "__main__":
    N, n_in, n_h, n_h2, n_motif, n_class = 8, 32, 32, 32, 2, 4

    key = jax.random.PRNGKey(0)
    keys = iter(jax.random.split(key, 32))

    def make_adj(k):
        a = (jax.random.uniform(k, (N, N)) < 0.4).astype(jnp.float32)
        a = jnp.maximum(a, a.T) + jnp.eye(N, dtype=jnp.float32)
        return a / jnp.sum(a, axis=1, keepdims=True)

    x = jax.random.normal(next(keys), (N, n_in), jnp.float32)
    shuf_fts = x[jax.random.permutation(next(keys), N)]
    adj = make_adj(next(keys))
    motif_batch = jnp.stack([make_adj(next(keys)) for _ in range(n_motif)], axis=0)

    def glorot(k, shape):
        fan_in = shape[-2] if len(shape) > 1 else shape[0]
        return jax.random.normal(k, shape, jnp.float32) / jnp.sqrt(jnp.float32(fan_in))

    params = {
        "gcn_w": glorot(next(keys), (n_in, n_h)),
        "gcn_b": jnp.zeros((1, n_h), jnp.float32),
        "gcn_alpha": jnp.array([0.25], jnp.float32),    # PReLU default init
        "act_alpha": jnp.array([0.25], jnp.float32),
        "motif_w": glorot(next(keys), (n_motif, n_h, n_h2)),
        "motif_b": jnp.zeros((n_motif, 1, n_h2), jnp.float32),
        "motif_alpha": jnp.full((n_motif,), 0.25, jnp.float32),
        "disc_m": glorot(next(keys), (n_motif, n_h2, n_h2)),
        "disc_b": jnp.zeros((n_motif,), jnp.float32),
        "att_w": glorot(next(keys), (n_h2, n_h2)),
        "att_b": jnp.zeros((1, n_h2), jnp.float32),
        "att_u": glorot(next(keys), (n_h2, 1)),
        "lin_w": glorot(next(keys), (n_h, n_class)),
        "lin_b": jnp.zeros((1, n_class), jnp.float32),
    }

    dropout_key = next(keys)

    logits, predicts, weights = motif_emb_forward(
        params, x, adj, motif_batch, shuf_fts, dropout_key, training=True)
    jax.block_until_ready((logits, predicts, weights))

    assert logits.shape == (1, 2 * N * n_motif)
    assert predicts.shape == (N, n_class)
    assert weights.shape == (n_motif, 2 * N)
    assert bool(jnp.all(jnp.isfinite(logits)))
    assert bool(jnp.all(jnp.isfinite(predicts)))
    assert bool(jnp.all(jnp.isfinite(weights)))

    print("KERNEL_OK")
</pallas_src>

<mosaic_0001>
module attributes {stable_mosaic.version = 11 : i64} {
  func.func @base_gcn_kernel(%arg0: memref<8x32xf32, #tpu.memory_space<vmem>>, %arg1: memref<8x32xf32, #tpu.memory_space<vmem>>, %arg2: memref<32x32xf32, #tpu.memory_space<vmem>>, %arg3: memref<8x8xf32, #tpu.memory_space<vmem>>, %arg4: memref<1x32xf32, #tpu.memory_space<vmem>>, %arg5: memref<8x64xf32, #tpu.memory_space<vmem>>, %arg6: memref<1xf32, #tpu.memory_space<smem>>, %arg7: memref<1xf32, #tpu.memory_space<smem>>, %arg8: memref<8x64xf32, #tpu.memory_space<vmem>>) attributes {dimension_semantics = [], scalar_prefetch = 0 : i64, scratch_operands = 0 : i64, tpu.core_type = #tpu.core_type<tc>} {
    %c0 = arith.constant 0 : index
    %c0_0 = arith.constant 0 : index
    %0 = vector.load %arg0[%c0, %c0_0] : memref<8x32xf32, #tpu.memory_space<vmem>>, vector<8x32xf32>
    %c0_1 = arith.constant 0 : index
    %c0_2 = arith.constant 0 : index
    %1 = vector.load %arg2[%c0_1, %c0_2] : memref<32x32xf32, #tpu.memory_space<vmem>>, vector<32x32xf32>
    %cst = arith.constant dense<0.000000e+00> : vector<8x32xf32>
    %2 = tpu.matmul %0, %1, %cst {dimension_numbers = #tpu.dot_dimension_numbers<[1], [0], [0], [1], [0, 0, 1, 1], [], []>} : vector<8x32xf32>, vector<32x32xf32>, vector<8x32xf32> -> vector<8x32xf32>
    %c0_3 = arith.constant 0 : index
    %c0_4 = arith.constant 0 : index
    %3 = vector.load %arg1[%c0_3, %c0_4] : memref<8x32xf32, #tpu.memory_space<vmem>>, vector<8x32xf32>
    %c0_5 = arith.constant 0 : index
    %c0_6 = arith.constant 0 : index
    %4 = vector.load %arg2[%c0_5, %c0_6] : memref<32x32xf32, #tpu.memory_space<vmem>>, vector<32x32xf32>
    %cst_7 = arith.constant dense<0.000000e+00> : vector<8x32xf32>
    %5 = tpu.matmul %3, %4, %cst_7 {dimension_numbers = #tpu.dot_dimension_numbers<[1], [0], [0], [1], [0, 0, 1, 1], [], []>} : vector<8x32xf32>, vector<32x32xf32>, vector<8x32xf32> -> vector<8x32xf32>
    %6 = tpu.concatenate %2, %5 in 1 : vector<8x32xf32>, vector<8x32xf32> -> vector<8x64xf32>
    %c0_8 = arith.constant 0 : index
    %c0_9 = arith.constant 0 : index
    %7 = vector.load %arg3[%c0_8, %c0_9] : memref<8x8xf32, #tpu.memory_space<vmem>>, vector<8x8xf32>
    %cst_10 = arith.constant dense<0.000000e+00> : vector<8x64xf32>
    %8 = tpu.matmul %7, %6, %cst_10 {dimension_numbers = #tpu.dot_dimension_numbers<[1], [0], [0], [1], [0, 0, 1, 1], [], []>} : vector<8x8xf32>, vector<8x64xf32>, vector<8x64xf32> -> vector<8x64xf32>
    %c0_11 = arith.constant 0 : index
    %c0_12 = arith.constant 0 : index
    %9 = vector.load %arg4[%c0_11, %c0_12] : memref<1x32xf32, #tpu.memory_space<vmem>>, vector<1x32xf32>
    %c0_13 = arith.constant 0 : index
    %c0_14 = arith.constant 0 : index
    %10 = vector.load %arg4[%c0_13, %c0_14] : memref<1x32xf32, #tpu.memory_space<vmem>>, vector<1x32xf32>
    %11 = tpu.concatenate %9, %10 in 1 : vector<1x32xf32>, vector<1x32xf32> -> vector<1x64xf32>
    %12 = vector.broadcast %11 : vector<1x64xf32> to vector<8x64xf32>
    %13 = arith.addf %8, %12 : vector<8x64xf32>
    %c0_15 = arith.constant 0 : index
    %14 = memref.load %arg6[%c0_15] : memref<1xf32, #tpu.memory_space<smem>>
    %cst_16 = arith.constant 0.000000e+00 : f32
    %15 = vector.broadcast %cst_16 : f32 to vector<8x64xf32>
    %16 = arith.cmpf oge, %13, %15 : vector<8x64xf32>
    %17 = vector.broadcast %14 : f32 to vector<8x64xf32>
    %18 = arith.mulf %17, %13 : vector<8x64xf32>
    %19 = arith.select %16, %13, %18 : vector<8x64xi1>, vector<8x64xf32>
    %c0_17 = arith.constant 0 : index
    %20 = memref.load %arg7[%c0_17] : memref<1xf32, #tpu.memory_space<smem>>
    %cst_18 = arith.constant 0.000000e+00 : f32
    %21 = vector.broadcast %cst_18 : f32 to vector<8x64xf32>
    %22 = arith.cmpf oge, %19, %21 : vector<8x64xf32>
    %23 = vector.broadcast %20 : f32 to vector<8x64xf32>
    %24 = arith.mulf %23, %19 : vector<8x64xf32>
    %25 = arith.select %22, %19, %24 : vector<8x64xi1>, vector<8x64xf32>
    %c0_19 = arith.constant 0 : index
    %c0_20 = arith.constant 0 : index
    %26 = vector.load %arg5[%c0_19, %c0_20] : memref<8x64xf32, #tpu.memory_space<vmem>>, vector<8x64xf32>
    %27 = arith.mulf %25, %26 : vector<8x64xf32>
    %c0_21 = arith.constant 0 : index
    %c0_22 = arith.constant 0 : index
    %28 = vector.load %arg8[%c0_21, %c0_22] : memref<8x64xf32, #tpu.memory_space<vmem>>, vector<8x64xf32>
    tpu.vector_store %arg8[%c0_21, %c0_22], %27 {strides = array<i32>} : memref<8x64xf32, #tpu.memory_space<vmem>>, vector<8x64xf32>,
    return
  }
}

</mosaic_0001>

<bundles_post_ra>
// kernel: tpu_custom_call.1
= control target key start
LH: loop header
LB: loop body
LE: loop exit
PB: predicated region body
PF: predicated region fallthrough
CT: control target
= control target key end

     0   :  { %15 = vsyncpa [#allocation5], 0  ;;  %s476_s0 = inlined_call_operand.hbm [shape: f32[8,32], index: 0, kind: input, shape index: {}]   ;;  %s477_s1 = inlined_call_operand.hbm [shape: f32[8,32], index: 1, kind: input, shape index: {}]   ;;  %s478_s2 = inlined_call_operand.hbm [shape: f32[32,32], index: 2, kind: input, shape index: {}]   ;;  %s479_s3 = inlined_call_operand.hbm [shape: f32[8,8], index: 3, kind: input, shape index: {}]   ;;  %s480_s4 = inlined_call_operand.hbm [shape: f32[1,32], index: 4, kind: input, shape index: {}]   ;;  %s481_s5 = inlined_call_operand.vmem [shape: f32[8,64], index: 5, kind: input, shape index: {}]   ;;  %s482_s6 = inlined_call_operand.<no memory space> [shape: f32[1], index: 6, kind: input, shape index: {}]   ;;  %s483_s7 = inlined_call_operand.<no memory space> [shape: f32[1], index: 7, kind: input, shape index: {}]   ;;  %s484_s8 = inlined_call_operand.hbm [shape: f32[8,64], index: 8, kind: output, shape index: {}]  }
   0x1   :  { %16 = vsyncpa [#allocation8], 0 }
   0x2   :  { %17 = vsyncpa [#allocation11], 0  ;;  %s35_s29 = sshll.u32 %s477_s1, 4  ;;  %s36_s29 = int_to_ptr.hbm [resolvable:$true] %s35_s29 }
   0x3   :  { %18 = vsyncpa [#allocation6], 0  ;;  %s391_s30 = smov [#allocation7]   ;;  %s59_s12 = sshll.u32 %s479_s3, 4  ;;  %s60_s12 = int_to_ptr.hbm [resolvable:$true] %s59_s12 }
   0x4   :  { %s37_s9 = sshll.u32 %s391_s30, 4  ;;  %s392_s13 = smov [#allocation10]   ;;  %s38_s9 = int_to_ptr.vmem [resolvable:$true] %s37_s9 }
   0x5   :  { %40 = dma.hbm_to_vmem [thread:$0]  %s36_s29, 128, %s38_s9, [#allocation8]  }
   0x6   :  { %s61_s14 = sshll.u32 %s392_s13, 4  ;;  %s24_s17 = sshll.u32 %s476_s0, 4  ;;  %s62_s14 = int_to_ptr.vmem [resolvable:$true] %s61_s14  ;;  %s25_s17 = int_to_ptr.hbm [resolvable:$true] %s24_s17 }
   0x7   :  { %64 = dma.hbm_to_vmem [thread:$0]  %s60_s12, 128, %s62_s14, [#allocation11]  }
   0x8   :  { %s45_s19 = sshll.u32 %s478_s2, 4  ;;  %s393_s20 = smov [#allocation4]   ;;  %s46_s19 = int_to_ptr.hbm [resolvable:$true] %s45_s19 }
   0x9   :  { %s26_s21 = sshll.u32 %s393_s20, 4  ;;  %s394_s3 = smov [#allocation9]   ;;  %s27_s21 = int_to_ptr.vmem [resolvable:$true] %s26_s21 }
   0xa   :  { %29 = dma.hbm_to_vmem [thread:$0]  %s25_s17, 128, %s27_s21, [#allocation5]  }
   0xb   :  { %s47_s22 = sshll.u32 %s394_s3, 4  ;;  %s395_s23 = smov 128   ;;  %s48_s22 = int_to_ptr.vmem [resolvable:$true] %s47_s22 }
   0xc   :  { %s396_s24 = smov 8   ;;  %s70_s26 = sshll.u32 %s480_s4, 4  ;;  %s71_s26 = int_to_ptr.hbm [resolvable:$true] %s70_s26 }
   0xd   :  { %53 = dma.hbm_to_vmem [thread:$0]  %s46_s19, 512, %s48_s22, [#allocation8], %s395_s23, %s395_s23, %s396_s24  }
   0xe   :  { %s397_s27 = smov [#allocation12]  }
   0xf   :  { %s72_s28 = sshll.u32 %s397_s27, 4  ;;  %s73_s28 = int_to_ptr.vmem [resolvable:$true] %s72_s28 }
  0x10   :  { %75 = dma.hbm_to_vmem [thread:$0]  %s71_s26, 16, %s73_s28, [#allocation11]  }
  0x11   :  { %383 = dma.done.wait [#allocation5], 128  }
  0x12   :  { %384 = vsyncadd [#allocation5], 4294967168 }
  0x13   :  { %385 = dma.done.wait [#allocation8], 640  }
  0x14   :  { %386 = vsyncadd [#allocation8], 4294966656 }
  0x15   :  { %387 = dma.done.wait [#allocation11], 144  }
  0x16   :  { %388 = vsyncadd [#allocation11], 4294967152  ;;  %v106_v0 = vld [vmem:[#allocation9 + $0x18] sm:$0xff]  ;;  %v105_v1 = vld [vmem:[#allocation9 + $0x10] sm:$0xff]  ;;  %vm107_vm0 = vcmask 261120   ;;  %s398_s2 = smov 32   ;;  %v195_v17 = vstv %s482_s6  ;;  %v200_v20 = vstv %s483_s7 }
  0x17   :  { %147 = vmatpush.msra.mxu1 %v106_v0  ;;  %123 = vmatpush.msra.mxu0 %v106_v0  ;;  %v104_v2 = vld [vmem:[#allocation9 + $0x8] sm:$0xff]  ;;  %v103_v3 = vld [vmem:[#allocation9] sm:$0xff]  ;;  %v131_v4 = vld [vmem:[#allocation7] sm:$0xff]  ;;  %vm169_vm1 = vcmask 64512   ;;  %s399_s12 = smov [#allocation13]   ;;  %s214_s6 = sshll.u32 %s484_s8, 4  ;;  %s215_s6 = int_to_ptr.hbm [resolvable:$true] %s214_s6 }
  0x18   :  { %v102_v5 = vld [vmem:[#allocation4] sm:$0xff]  ;;  %v238_v7 = vld [vmem:[#allocation12] ss:$0 sm:$0xff]  ;;  %v160_v10 = vld [vmem:[#allocation10] sm:$0xff]  ;;  %s212_s13 = sshll.u32 %s399_s12, 4  ;;  %vm205_vm4 = vcmask 523264   ;;  %s213_s13 = int_to_ptr.vmem [resolvable:$true] %s212_s13 }
  0x19   :  { %148 = vmatpush.msra.mxu1 %v105_v1  ;;  %124 = vmatpush.msra.mxu0 %v105_v1  ;;  %v161_v12 = vld [vmem:[#allocation12] sm:$0x1]  ;;  %v203_v23 = vld [vmem:[%s481_s5] sm:$0xff] }
  0x1b   :  { %149 = vmatpush.msra.mxu1 %v104_v2  ;;  %125 = vmatpush.msra.mxu0 %v104_v2 }
  0x1d   :  { %150 = vmatpush.msra.mxu1 %v103_v3  ;;  %126 = vmatpush.msra.mxu0 %v103_v3 }
  0x1e   :  { %227 = vmatmul.msk.f32.vlgmr.msra.gmra.mxu1 %vm107_vm0, %v131_v4  ;;  %226 = vmatmul.msk.f32.vlgmr.msra.gmra.mxu0 %vm107_vm0, %v102_v5 }
  0x9b   :  { %v152_v6 = vpop.f32.mrf.mxu1  ;;  %v128_v8 = vpop.f32.mrf.mxu0 }
  0x9c   :  { %156 = vrot.lane.b32.xlu0 %v152_v6, %s398_s2 }
  0xa4   :  { %164 = vrot.lane.b32.xlu0 %v238_v7, %s398_s2 }
 0x10e   :  { %v157_v9 = vpop.permute.xlu0 %156 }
 0x10f   :  { %v159_v11 = vsel %vm107_vm0, %v128_v8, %v157_v9 }
 0x110   :  { %188 = vmatpush.msra.mxu2 %v159_v11 }
 0x111   :  { %228 = vmatmul.msk.f32.vlgmr.msra.gmra.mxu2 %vm169_vm1, %v160_v10 }
 0x116   :  { %v165_v13 = vpop.permute.xlu0 %164 }
 0x117   :  { %v167_v14 = vsel %vm107_vm0, %v161_v12, %v165_v13 }
 0x118   :  { %v168_v15 = vperm.slane %v167_v14, 0 }
 0x194   :  { %v190_v16 = vpop.f32.mrf.mxu2 }
 0x195   :  { %v191_v18 = vadd.f32 %v190_v16, %v168_v15 }
 0x197   :  { %vm194_vm2 = vcmp.ge.f32.partialorder %v191_v18, 0.0  ;;  %v196_v19 = vmul.f32 %v195_v17, %v191_v18 }
 0x199   :  { %v197_v21 = vsel %vm194_vm2, %v191_v18, %v196_v19 }
 0x19a   :  { %vm199_vm3 = vcmp.ge.f32.partialorder %v197_v21, 0.0  ;;  %v201_v22 = vmul.f32 %v200_v20, %v197_v21 }
 0x19c   :  { %v202_v24 = vsel %vm199_vm3, %v197_v21, %v201_v22 }
 0x19d   :  { %v204_v25 = vmul.f32 %v203_v23, %v202_v24 }
 0x19f   :  { %206 = vst.msk [vmem:[#allocation13] sm:$0xff] %vm205_vm4, %v204_v25 }
 0x1a0   :  { %217 = dma.vmem_to_hbm [thread:$0]  %s213_s13, 128, %s215_s6, [#allocation6]  }
 0x1a1   :  { %389 = dma.done.wait [#allocation6], 128  }
 0x1a2   :  { %390 = vsyncadd [#allocation6], 4294967168 }
 0x1a3   :  { %222 = vsyncpa [#allocation5], 1 }
 0x1a4   :  { %223 = vsyncpa [#allocation8], 1 }
 0x1a5   :  { %224 = vsyncpa [#allocation11], 1 }
 0x1a6   :  { %225 = vsyncpa [#allocation6], 1 }

</bundles_post_ra>
